<compile_context>
chip_gen: v7x
topology: tpu7x:2x2x1
jax: 0.10.0
libtpu: 0.0.40
codegen_flags: <defaults>
</compile_context>

<pallas_src>
from itertools import combinations

import numpy as np
import jax
import jax.numpy as jnp
from jax.experimental import pallas as pl
from jax.experimental.pallas import tpu as pltpu


MARGIN = 1.0
_LANE = 128


def _round_up(x: int, m: int) -> int:
    return ((x + m - 1) // m) * m


def _pick_tile(dim_pad: int, preferred: int) -> int:
    """Largest multiple of 128 that is <= preferred and divides dim_pad."""
    t = min(preferred, dim_pad)
    while dim_pad % t != 0:
        t -= _LANE
    return t


# --------------------- Kernel 1: Gram matrix G = E @ E^T (MXU) ---------------------

def _gram_kernel(a_ref, b_ref, o_ref, acc_ref):
    @pl.when(pl.program_id(2) == 0)
    def _():
        acc_ref[...] = jnp.zeros_like(acc_ref)

    # A @ B^T without materializing B^T: contract the K (last) axis of both tiles.
    acc_ref[...] += jax.lax.dot_general(
        a_ref[...], b_ref[...],
        dimension_numbers=(((1,), (1,)), ((), ())),
        preferred_element_type=jnp.float32)

    # Store the output tile only once, on the final K step (output is grid-resident
    # across k since its index_map ignores k). Saves K-1 redundant vst's per tile.
    @pl.when(pl.program_id(2) == pl.num_programs(2) - 1)
    def _():
        o_ref[...] = acc_ref[...]


def _gram(e_pad: jax.Array, *, tm: int = 256, tn: int = 256, tk: int = 512) -> jax.Array:
    n_pad, d_pad = e_pad.shape
    tm = _pick_tile(n_pad, tm)
    tn = _pick_tile(n_pad, tn)
    tk = _pick_tile(d_pad, tk)
    return pl.pallas_call(
        _gram_kernel,
        out_shape=jax.ShapeDtypeStruct((n_pad, n_pad), jnp.float32),
        grid=(n_pad // tm, n_pad // tn, d_pad // tk),
        in_specs=[
            pl.BlockSpec((tm, tk), lambda i, j, k: (i, k)),
            pl.BlockSpec((tn, tk), lambda i, j, k: (j, k)),  # RHS read untransposed
        ],
        out_specs=pl.BlockSpec((tm, tn), lambda i, j, k: (i, j)),
        scratch_shapes=[pltpu.VMEM((tm, tn), jnp.float32)],
        compiler_params=pltpu.CompilerParams(
            dimension_semantics=("parallel", "parallel", "arbitrary")),
    )(e_pad, e_pad)


# ----------------- Kernel 2: streaming triplet loss -> (8, 128) partial sums -------

def _make_loss_kernel(margin: float, block_rows: int):
    def kernel(t_ref, diff_ref, out_ref):
        # diff_ref: (block_rows, 128) pre-combined Gram differences (one HBM stream).
        # t_ref: SMEM scalar-prefetch ref holding the true triplet count T.
        base = pl.program_id(0) * (block_rows * _LANE)
        rows = jax.lax.broadcasted_iota(jnp.int32, (block_rows, _LANE), 0)
        cols = jax.lax.broadcasted_iota(jnp.int32, (block_rows, _LANE), 1)
        flat_idx = base + rows * _LANE + cols
        mask = (flat_idx < t_ref[0]).astype(jnp.float32)   # in-kernel padding mask

        loss = jnp.maximum(diff_ref[...] + margin, 0.0) * mask

        # Lane-dense (8, 128) partial sums: fold sublane groups of 8, sum across
        # groups on the VPU; no masked stores, no full cross-sublane reduction.
        out_ref[...] = jnp.sum(loss.reshape(block_rows // 8, 8, _LANE), axis=0)
    return kernel


# --------------------------------- Wrapper -----------------------------------------

def online_triplet_loss(embeddings: jax.Array, triplets: np.ndarray, margin: float = MARGIN,
                        *, use_bf16_matmul: bool = False):
    """Pallas implementation of OnlineTripletLoss.forward given precomputed triplets.

    Returns (mean_loss, num_triplets) matching the PyTorch module.
    """
    triplets = np.asarray(triplets, dtype=np.int32)
    T = int(triplets.shape[0])
    if T == 0:
        # torch.mean of an empty tensor is NaN; mirror that explicitly.
        return jnp.float32(np.nan), 0

    e = jnp.asarray(embeddings, jnp.float32)
    # Mean-centering is loss-invariant (distances are differences) and limits
    # catastrophic cancellation in the 2G[a,n] - 2G[a,p] + G[p,p] - G[n,n] form.
    e = e - jnp.mean(e, axis=0, keepdims=True)
    N, D = e.shape
    n_pad = _round_up(max(N, 1), _LANE)
    d_pad = _round_up(max(D, 1), _LANE)
    e_pad = jnp.zeros((n_pad, d_pad), jnp.float32).at[:N, :D].set(e)
    if use_bf16_matmul:
        # ~3-6x MXU throughput and half the A/B DMA bytes; re-validate tolerance.
        e_pad = e_pad.astype(jnp.bfloat16)

    # One MXU matmul replaces all per-triplet embedding-row gathers / distance math.
    G = _gram(e_pad).reshape(-1)  # flattened (n_pad * n_pad,), f32

    # Block layout for the loss kernel: triplets map to (block_rows, 128) lane-dense tiles.
    rows = -(-T // _LANE)                           # number of 128-wide rows needed
    block_rows = min(1024, _round_up(rows, 8))      # 1024 rows => 512 KiB/block (f32)
    rows_pad = _round_up(rows, block_rows)
    t_pad = rows_pad * _LANE
    nb = rows_pad // block_rows

    tri = np.zeros((t_pad, 3), np.int32)
    tri[:T] = triplets
    a = jnp.asarray(tri[:, 0])
    p = jnp.asarray(tri[:, 1])
    n = jnp.asarray(tri[:, 2])

    # Four scalar gathers per triplet from the Gram matrix (XLA-side, tiny), fused
    # into ONE pre-combined stream for the Pallas kernel.
    # int32 flattened indices: safe while n_pad stays well below ~46k rows.
    g_ap = jnp.take(G, a * n_pad + p)
    g_an = jnp.take(G, a * n_pad + n)
    sq_p = jnp.take(G, p * (n_pad + 1))             # diag: G[p, p]
    sq_n = jnp.take(G, n * (n_pad + 1))             # diag: G[n, n]
    diff = (2.0 * (g_an - g_ap) + (sq_p - sq_n)).reshape(rows_pad, _LANE)

    t_scalar = jnp.asarray([T], jnp.int32)
    partials = pl.pallas_call(
        _make_loss_kernel(float(margin), block_rows),
        out_shape=jax.ShapeDtypeStruct((nb * 8, _LANE), jnp.float32),
        grid_spec=pltpu.PrefetchScalarGridSpec(
            num_scalar_prefetch=1,
            grid=(nb,),
            in_specs=[pl.BlockSpec((block_rows, _LANE), lambda i, t: (i, 0))],
            out_specs=pl.BlockSpec((8, _LANE), lambda i, t: (i, 0)),
        ),
        compiler_params=pltpu.CompilerParams(dimension_semantics=("parallel",)),
    )(t_scalar, diff)

    mean_loss = jnp.sum(partials) / jnp.float32(T)
    return mean_loss, T


# ------------------------- Host-side triplet mining glue ---------------------------

def all_triplets(labels: np.ndarray) -> np.ndarray:
    """Deterministic equivalent of AllTripletSelector.get_triplets (host-side glue)."""
    # TODO(synk): the original triplet_selector is an arbitrary user object; only the
    # exhaustive "all triplets" policy is reproduced here.
    labels = np.asarray(labels)
    triplets = []
    for lab in np.unique(labels):
        mask = labels == lab
        pos_idx = np.where(mask)[0]
        if len(pos_idx) < 2:
            continue
        neg_idx = np.where(~mask)[0]
        for a, p in combinations(pos_idx, 2):
            for n in neg_idx:
                triplets.append([a, p, n])
    return np.asarray(triplets, dtype=np.int32)


def _reference(embeddings, triplets, margin):
    e = np.asarray(embeddings, dtype=np.float32)
    t = np.asarray(triplets)
    ap = ((e[t[:, 0]] - e[t[:, 1]]) ** 2).sum(1)
    an = ((e[t[:, 0]] - e[t[:, 2]]) ** 2).sum(1)
    losses = np.maximum(ap - an + margin, 0.0)
    return losses.mean(), len(t)


if __name__ == "__main__":
    key = jax.random.PRNGKey(0)
    N, D = 8, 32
    embeddings = jax.random.normal(key, (N, D), dtype=jnp.float32)
    target = np.array([0, 0, 1, 1, 2, 2, 3, 3], dtype=np.int32)  # deterministic labels

    triplets = all_triplets(target)          # (24, 3) for these labels
    assert triplets.shape[0] > 0

    mean_loss, n_triplets = online_triplet_loss(embeddings, triplets, MARGIN)
    mean_loss = jax.block_until_ready(mean_loss)

    ref_loss, ref_n = _reference(np.asarray(embeddings), triplets, MARGIN)
    assert n_triplets == ref_n
    # Tolerance accommodates MXU matmul precision for the Gram formulation while still
    # catching any formulation/sign/index error (those produce >>2% deviations).
    assert np.allclose(np.asarray(mean_loss), ref_loss, rtol=2e-2, atol=2e-2), (
        f"kernel={float(mean_loss)} ref={float(ref_loss)}"
    )

    print("KERNEL_OK")
</pallas_src>

<mosaic_0001>
module attributes {stable_mosaic.version = 11 : i64} {
  func.func @_gram_kernel(%arg0: i32, %arg1: i32, %arg2: i32, %arg3: memref<128x128xf32, #tpu.memory_space<vmem>>, %arg4: memref<128x128xf32, #tpu.memory_space<vmem>>, %arg5: memref<128x128xf32, #tpu.memory_space<vmem>>, %arg6: memref<128x128xf32, #tpu.memory_space<vmem>>) attributes {dimension_semantics = [#tpu.dimension_semantics<parallel>, #tpu.dimension_semantics<parallel>, #tpu.dimension_semantics<arbitrary>], iteration_bounds = array<i64: 1, 1, 1>, scalar_prefetch = 0 : i64, scratch_operands = 1 : i64, tpu.core_type = #tpu.core_type<tc>, window_params = [{transform_indices = @transform_0, window_bounds = array<i64: 128, 128>}, {transform_indices = @transform_1, window_bounds = array<i64: 128, 128>}, {transform_indices = @transform_2, window_bounds = array<i64: 128, 128>}]} {
    %c0_i32 = arith.constant 0 : i32
    %0 = arith.cmpi eq, %arg2, %c0_i32 : i32
    %1 = arith.extui %0 : i1 to i32
    %c0_i32_0 = arith.constant 0 : i32
    %2 = arith.cmpi ne, %1, %c0_i32_0 : i32
    scf.if %2 {
      %cst_10 = arith.constant 0.000000e+00 : f32
      %12 = vector.broadcast %cst_10 : f32 to vector<128x128xf32>
      %c0_11 = arith.constant 0 : index
      %c0_12 = arith.constant 0 : index
      %13 = vector.load %arg6[%c0_11, %c0_12] : memref<128x128xf32, #tpu.memory_space<vmem>>, vector<128x128xf32>
      tpu.vector_store %arg6[%c0_11, %c0_12], %12 {strides = array<i32>} : memref<128x128xf32, #tpu.memory_space<vmem>>, vector<128x128xf32>,
    } else {
    }
    %c0 = arith.constant 0 : index
    %c0_1 = arith.constant 0 : index
    %3 = vector.load %arg6[%c0, %c0_1] : memref<128x128xf32, #tpu.memory_space<vmem>>, vector<128x128xf32>
    %c0_2 = arith.constant 0 : index
    %c0_3 = arith.constant 0 : index
    %4 = vector.load %arg3[%c0_2, %c0_3] : memref<128x128xf32, #tpu.memory_space<vmem>>, vector<128x128xf32>
    %c0_4 = arith.constant 0 : index
    %c0_5 = arith.constant 0 : index
    %5 = vector.load %arg4[%c0_4, %c0_5] : memref<128x128xf32, #tpu.memory_space<vmem>>, vector<128x128xf32>
    %cst = arith.constant dense<0.000000e+00> : vector<128x128xf32>
    %6 = tpu.matmul %4, %5, %cst {dimension_numbers = #tpu.dot_dimension_numbers<[1], [1], [0], [0], [0, 0, 1, 0], [], []>} : vector<128x128xf32>, vector<128x128xf32>, vector<128x128xf32> -> vector<128x128xf32>
    %7 = arith.addf %3, %6 : vector<128x128xf32>
    %c0_6 = arith.constant 0 : index
    %c0_7 = arith.constant 0 : index
    %8 = vector.load %arg6[%c0_6, %c0_7] : memref<128x128xf32, #tpu.memory_space<vmem>>, vector<128x128xf32>
    tpu.vector_store %arg6[%c0_6, %c0_7], %7 {strides = array<i32>} : memref<128x128xf32, #tpu.memory_space<vmem>>, vector<128x128xf32>,
    %c0_i32_8 = arith.constant 0 : i32
    %9 = arith.cmpi eq, %arg2, %c0_i32_8 : i32
    %10 = arith.extui %9 : i1 to i32
    %c0_i32_9 = arith.constant 0 : i32
    %11 = arith.cmpi ne, %10, %c0_i32_9 : i32
    scf.if %11 {
      %c0_10 = arith.constant 0 : index
      %c0_11 = arith.constant 0 : index
      %12 = vector.load %arg6[%c0_10, %c0_11] : memref<128x128xf32, #tpu.memory_space<vmem>>, vector<128x128xf32>
      %c0_12 = arith.constant 0 : index
      %c0_13 = arith.constant 0 : index
      %13 = vector.load %arg5[%c0_12, %c0_13] : memref<128x128xf32, #tpu.memory_space<vmem>>, vector<128x128xf32>
      tpu.vector_store %arg5[%c0_12, %c0_13], %12 {strides = array<i32>} : memref<128x128xf32, #tpu.memory_space<vmem>>, vector<128x128xf32>,
    } else {
    }
    return
  }
  func.func @transform_0(%arg0: i32, %arg1: i32, %arg2: i32) -> (i32, i32) {
    %c0_i32 = arith.constant 0 : i32
    return %arg0, %arg2 : i32, i32
  }
  func.func @transform_1(%arg0: i32, %arg1: i32, %arg2: i32) -> (i32, i32) {
    %c0_i32 = arith.constant 0 : i32
    return %arg1, %arg2 : i32, i32
  }
  func.func @transform_2(%arg0: i32, %arg1: i32, %arg2: i32) -> (i32, i32) {
    %c0_i32 = arith.constant 0 : i32
    return %arg0, %arg1 : i32, i32
  }
}

</mosaic_0001>

<bundles_post_ra>
// kernel: tpu_custom_call.1
= control target key start
LH: loop header
LB: loop body
LE: loop exit
PB: predicated region body
PF: predicated region fallthrough
CT: control target
= control target key end

     0   :  { %7 = vsyncpa [#allocation4], 0  ;;  %s616_s0 = inlined_call_operand.hbm [shape: f32[128,128], index: 0, kind: input, shape index: {}]   ;;  %s617_s1 = inlined_call_operand.hbm [shape: f32[128,128], index: 1, kind: input, shape index: {}]   ;;  %s618_s2 = inlined_call_operand.hbm [shape: f32[128,128], index: 2, kind: output, shape index: {}]  }
   0x1   :  { %8 = vsyncpa [#allocation7], 0 }
   0x2   :  { %9 = vsyncpa [#allocation5], 0  ;;  %s551_s9 = smov [#allocation3]   ;;  %s479_s13 = scalar_lea.hbm %s616_s0, 2048 }
   0x3   :  { %s15_s10 = sshll.u32 %s551_s9, 4  ;;  %p480_p0 = scmp.ne.s32.totalorder %s616_s0, %s479_s13  ;;  %s16_s10 = int_to_ptr.vmem [resolvable:$true] %s15_s10 }
   0x4   :  { %p483_p1 = scmp.lt.u32.totalorder %s479_s13, %s616_s0 }
   0x6   :  { %p485_p2 = pnand %p483_p1, %p480_p0 }
   0x8   :  { %488 = shalt.err (!%p485_p2)
}
   0x9   :  { %s489_s18 = scalar_lea.vmem %s16_s10, 2048  ;;  %p494_p4 = scmp.lt.s32.totalorder %s16_s10, %s16_s10 }
   0xa   :  { %p490_p3 = scmp.ne.s32.totalorder %s16_s10, %s489_s18  ;;  %p495_p5 = scmp.lt.s32.totalorder %s489_s18, %s489_s18 }
   0xc   :  { %p496_p6 = por %p495_p5, %p494_p4 }
   0xe   :  { %p497_p7 = pnand %p496_p6, %p490_p3 }
  0x10   :  { %500 = shalt.err (!%p497_p7)
}
  0x11   :  { %s552_s19 = smov 128   ;;  %s553_s20 = smov 8  }
  0x12   :  { %21 = dma.hbm_to_vmem [thread:$0]  %s616_s0, 2048, %s16_s10, [#allocation4], %s552_s19, %s552_s19, %s553_s20  }
  0x13   :  { %s554_s23 = smov [#allocation6]   ;;  %s501_s27 = scalar_lea.hbm %s617_s1, 2048 }
  0x14   :  { %s27_s24 = sshll.u32 %s554_s23, 4  ;;  %p502_p8 = scmp.ne.s32.totalorder %s617_s1, %s501_s27  ;;  %s28_s24 = int_to_ptr.vmem [resolvable:$true] %s27_s24 }
  0x15   :  { %p505_p9 = scmp.lt.u32.totalorder %s501_s27, %s617_s1 }
  0x17   :  { %p507_p10 = pnand %p505_p9, %p502_p8 }
  0x19   :  { %510 = shalt.err (!%p507_p10)
}
  0x1a   :  { %s511_s4 = scalar_lea.vmem %s28_s24, 2048  ;;  %p516_p12 = scmp.lt.s32.totalorder %s28_s24, %s28_s24 }
  0x1b   :  { %p512_p11 = scmp.ne.s32.totalorder %s28_s24, %s511_s4  ;;  %p517_p13 = scmp.lt.s32.totalorder %s511_s4, %s511_s4 }
  0x1d   :  { %p518_p0 = por %p517_p13, %p516_p12 }
  0x1f   :  { %p519_p1 = pnand %p518_p0, %p512_p11 }
  0x21   :  { %522 = shalt.err (!%p519_p1)
}
  0x22   :  { %33 = dma.hbm_to_vmem [thread:$0]  %s617_s1, 2048, %s28_s24, [#allocation7], %s552_s19, %s552_s19, %s553_s20  }
  0x23   :  { %545 = dma.done.wait [#allocation4], 2048  }
  0x24   :  { %546 = vsyncadd [#allocation4], 4294965248 }
  0x25   :  { %547 = dma.done.wait [#allocation7], 2048  }
  0x26   :  { %548 = vsyncadd [#allocation7], 4294965248  ;;  %v92_v0 = vld [vmem:[#allocation6] sm:$0xff]  ;;  %v93_v1 = vld [vmem:[#allocation6 + $0x8] sm:$0xff]  ;;  %s555_s1 = smov [#allocation8]  }
  0x27   :  { %v94_v2 = vld [vmem:[#allocation6 + $0x10] sm:$0xff]  ;;  %v426_v3 = vpack.c.bf16 %v93_v1, %v92_v0  ;;  %v95_v4 = vld [vmem:[#allocation6 + $0x18] sm:$0xff]  ;;  %v76_v6 = vld [vmem:[#allocation3] sm:$0xff]  ;;  %s325_s6 = sshll.u32 %s555_s1, 4  ;;  %s326_s6 = int_to_ptr.vmem [resolvable:$true] %s325_s6 }
  0x28   :  { %v430_v5 = vpack.c.bf16 %v95_v4, %v94_v2  ;;  %v84_v7 = vld [vmem:[#allocation3 + $0x40] sm:$0xff]  ;;  %v97_v9 = vld [vmem:[#allocation6 + $0x28] sm:$0xff]  ;;  %402 = vmatprep.mubr.f32.mxu0 %v76_v6  ;;  %v98_v11 = vld [vmem:[#allocation6 + $0x30] sm:$0xff]  ;;  %s523_s7 = scalar_lea.vmem %s326_s6, 2048  ;;  %p528_p3 = scmp.lt.s32.totalorder %s326_s6, %s326_s6 }
  0x29   :  { %427 = vmatprep.subr.bf16.mxu0 %v426_v3  ;;  %458 = vmatprep.subr.bf16.mxu1 %v426_v3  ;;  %v96_v8 = vld [vmem:[#allocation6 + $0x20] sm:$0xff]  ;;  %v99_v12 = vld [vmem:[#allocation6 + $0x38] sm:$0xff]  ;;  %v101_v15 = vld [vmem:[#allocation6 + $0x48] sm:$0xff]  ;;  %p524_p2 = scmp.ne.s32.totalorder %s326_s6, %s523_s7  ;;  %p529_p4 = scmp.lt.s32.totalorder %s523_s7, %s523_s7 }
  0x2a   :  { %429 = vmatpush3.bf16.xpose.msra.mxu0 %v426_v3  ;;  %466 = vmatpush3.bf16.xpose.msra.mxu1 %v426_v3  ;;  %v434_v10 = vpack.c.bf16 %v97_v9, %v96_v8  ;;  %v438_v13 = vpack.c.bf16 %v99_v12, %v98_v11  ;;  %v100_v14 = vld [vmem:[#allocation6 + $0x40] sm:$0xff]  ;;  %v102_v17 = vld [vmem:[#allocation6 + $0x50] sm:$0xff]  ;;  %v103_v18 = vld [vmem:[#allocation6 + $0x58] sm:$0xff] }
  0x2b   :  { %431 = vmatprep.subr.bf16.mxu0 %v430_v5  ;;  %459 = vmatprep.subr.bf16.mxu1 %v430_v5  ;;  %v442_v16 = vpack.c.bf16 %v101_v15, %v100_v14  ;;  %v446_v19 = vpack.c.bf16 %v103_v18, %v102_v17  ;;  %v104_v20 = vld [vmem:[#allocation6 + $0x60] sm:$0xff]  ;;  %v105_v21 = vld [vmem:[#allocation6 + $0x68] sm:$0xff]  ;;  %v106_v23 = vld [vmem:[#allocation6 + $0x70] sm:$0xff]  ;;  %p530_p5 = por %p529_p4, %p528_p3 }
  0x2c   :  { %414 = vmatprep.mubr.f32.mxu1 %v84_v7  ;;  %v450_v22 = vpack.c.bf16 %v105_v21, %v104_v20  ;;  %v107_v24 = vld [vmem:[#allocation6 + $0x78] sm:$0xff]  ;;  %v77_v26 = vld [vmem:[#allocation3 + $0x8] sm:$0xff]  ;;  %v78_v28 = vld [vmem:[#allocation3 + $0x10] sm:$0xff] }
  0x2d   :  { %v454_v25 = vpack.c.bf16 %v107_v24, %v106_v23  ;;  %v85_v27 = vld [vmem:[#allocation3 + $0x48] sm:$0xff]  ;;  %v86_v29 = vld [vmem:[#allocation3 + $0x50] sm:$0xff]  ;;  %v79_v30 = vld [vmem:[#allocation3 + $0x18] sm:$0xff]  ;;  %p531_p6 = pnand %p530_p5, %p524_p2 }
  0x2e   :  { %v87_v31 = vld [vmem:[#allocation3 + $0x58] sm:$0xff]  ;;  %v80_v32 = vld [vmem:[#allocation3 + $0x20] sm:$0xff]  ;;  %v81_v34 = vld [vmem:[#allocation3 + $0x28] sm:$0xff] }
  0x2f   :  { %v88_v33 = vld [vmem:[#allocation3 + $0x60] sm:$0xff]  ;;  %v89_v35 = vld [vmem:[#allocation3 + $0x68] sm:$0xff]  ;;  %v82_v36 = vld [vmem:[#allocation3 + $0x30] sm:$0xff] }
  0x30   :  { %v90_v37 = vld [vmem:[#allocation3 + $0x70] sm:$0xff]  ;;  %v83_v38 = vld [vmem:[#allocation3 + $0x38] sm:$0xff] }
  0x31   :  { %v91_v39 = vld [vmem:[#allocation3 + $0x78] sm:$0xff] }
  0x32   :  { %433 = vmatpush3.bf16.xpose.msra.mxu0 %v430_v5  ;;  %467 = vmatpush3.bf16.xpose.msra.mxu1 %v430_v5 }
  0x33   :  { %435 = vmatprep.subr.bf16.mxu0 %v434_v10  ;;  %460 = vmatprep.subr.bf16.mxu1 %v434_v10 }
  0x3a   :  { %437 = vmatpush3.bf16.xpose.msra.mxu0 %v434_v10  ;;  %468 = vmatpush3.bf16.xpose.msra.mxu1 %v434_v10 }
  0x3b   :  { %439 = vmatprep.subr.bf16.mxu0 %v438_v13  ;;  %461 = vmatprep.subr.bf16.mxu1 %v438_v13 }
  0x42   :  { %441 = vmatpush3.bf16.xpose.msra.mxu0 %v438_v13  ;;  %469 = vmatpush3.bf16.xpose.msra.mxu1 %v438_v13 }
  0x43   :  { %443 = vmatprep.subr.bf16.mxu0 %v442_v16  ;;  %462 = vmatprep.subr.bf16.mxu1 %v442_v16 }
  0x4a   :  { %445 = vmatpush3.bf16.xpose.msra.mxu0 %v442_v16  ;;  %470 = vmatpush3.bf16.xpose.msra.mxu1 %v442_v16 }
  0x4b   :  { %447 = vmatprep.subr.bf16.mxu0 %v446_v19  ;;  %463 = vmatprep.subr.bf16.mxu1 %v446_v19 }
  0x52   :  { %449 = vmatpush3.bf16.xpose.msra.mxu0 %v446_v19  ;;  %471 = vmatpush3.bf16.xpose.msra.mxu1 %v446_v19 }
  0x53   :  { %451 = vmatprep.subr.bf16.mxu0 %v450_v22  ;;  %464 = vmatprep.subr.bf16.mxu1 %v450_v22 }
  0x5a   :  { %453 = vmatpush3.bf16.xpose.msra.mxu0 %v450_v22  ;;  %472 = vmatpush3.bf16.xpose.msra.mxu1 %v450_v22 }
  0x5b   :  { %455 = vmatprep.subr.bf16.mxu0 %v454_v25  ;;  %465 = vmatprep.subr.bf16.mxu1 %v454_v25 }
  0x62   :  { %457 = vmatpush3.bf16.xpose.msra.mxu0 %v454_v25  ;;  %473 = vmatpush3.bf16.xpose.msra.mxu1 %v454_v25 }
  0x69   :  { %403 = vmatmul.mubr.f32.vlgmr.msra.gmra.mrb[0].mxu0 %v77_v26  ;;  %415 = vmatmul.mubr.f32.vlgmr.msra.gmra.mrb[0].mxu1 %v85_v27 }
  0x6a   :  { %405 = vmatprep.mubr.f32.mxu0 %v78_v28  ;;  %417 = vmatprep.mubr.f32.mxu1 %v86_v29 }
  0x6d   :  { %406 = vmatmul.mubr.f32.gmra.mrb[2].mxu0 %v79_v30  ;;  %418 = vmatmul.mubr.f32.gmra.mrb[2].mxu1 %v87_v31 }
  0x6e   :  { %408 = vmatprep.mubr.f32.mxu0 %v80_v32  ;;  %420 = vmatprep.mubr.f32.mxu1 %v88_v33 }
  0x71   :  { %409 = vmatmul.mubr.f32.gmra.mrb[4].mxu0 %v81_v34  ;;  %421 = vmatmul.mubr.f32.gmra.mrb[4].mxu1 %v89_v35 }
  0x72   :  { %411 = vmatprep.mubr.f32.mxu0 %v82_v36  ;;  %423 = vmatprep.mubr.f32.mxu1 %v90_v37 }
  0x75   :  { %412 = vmatmul.mubr.f32.gmra.mrb[6].mxu0 %v83_v38  ;;  %424 = vmatmul.mubr.f32.gmra.mrb[6].mxu1 %v91_v39 }
 0x13c   :  { %v404_v40 = vpop.f32.mrb[0].mxu0  ;;  %v416_v41 = vpop.f32.mrb[0].mxu1 }
 0x13d   :  { %305 = vst [vmem:[#allocation8 + $0x8] sm:$0xff] %v404_v40  ;;  %313 = vst [vmem:[#allocation8 + $0x48] sm:$0xff] %v416_v41  ;;  %v174_v42 = vpop.f32.mrb[1].mxu0  ;;  %v214_v43 = vpop.f32.mrb[1].mxu1 }
 0x13e   :  { %304 = vst [vmem:[#allocation8] sm:$0xff] %v174_v42  ;;  %312 = vst [vmem:[#allocation8 + $0x40] sm:$0xff] %v214_v43 }
 0x140   :  { %v407_v44 = vpop.f32.mrb[2].mxu0  ;;  %v419_v45 = vpop.f32.mrb[2].mxu1 }
 0x141   :  { %307 = vst [vmem:[#allocation8 + $0x18] sm:$0xff] %v407_v44  ;;  %315 = vst [vmem:[#allocation8 + $0x58] sm:$0xff] %v419_v45  ;;  %v184_v46 = vpop.f32.mrb[3].mxu0  ;;  %v224_v47 = vpop.f32.mrb[3].mxu1 }
 0x142   :  { %306 = vst [vmem:[#allocation8 + $0x10] sm:$0xff] %v184_v46  ;;  %314 = vst [vmem:[#allocation8 + $0x50] sm:$0xff] %v224_v47 }
 0x144   :  { %v410_v48 = vpop.f32.mrb[4].mxu0  ;;  %v422_v49 = vpop.f32.mrb[4].mxu1 }
 0x145   :  { %309 = vst [vmem:[#allocation8 + $0x28] sm:$0xff] %v410_v48  ;;  %317 = vst [vmem:[#allocation8 + $0x68] sm:$0xff] %v422_v49  ;;  %v194_v50 = vpop.f32.mrb[5].mxu0  ;;  %v234_v51 = vpop.f32.mrb[5].mxu1 }
 0x146   :  { %308 = vst [vmem:[#allocation8 + $0x20] sm:$0xff] %v194_v50  ;;  %316 = vst [vmem:[#allocation8 + $0x60] sm:$0xff] %v234_v51 }
 0x148   :  { %v413_v52 = vpop.f32.mrb[6].mxu0  ;;  %v425_v53 = vpop.f32.mrb[6].mxu1 }
 0x149   :  { %311 = vst [vmem:[#allocation8 + $0x38] sm:$0xff] %v413_v52  ;;  %319 = vst [vmem:[#allocation8 + $0x78] sm:$0xff] %v425_v53  ;;  %v204_v54 = vpop.f32.mrb[7].mxu0  ;;  %v244_v55 = vpop.f32.mrb[7].mxu1 }
 0x14a   :  { %310 = vst [vmem:[#allocation8 + $0x30] sm:$0xff] %v204_v54  ;;  %318 = vst [vmem:[#allocation8 + $0x70] sm:$0xff] %v244_v55 }
 0x14b   :  { %534 = shalt.err (!%p531_p6)
}
 0x14c   :  { %s535_s10 = scalar_lea.hbm %s618_s2, 2048 }
 0x14d   :  { %p536_p7 = scmp.ne.s32.totalorder %s618_s2, %s535_s10  ;;  %p539_p8 = scmp.lt.u32.totalorder %s535_s10, %s618_s2 }
 0x14f   :  { %p541_p9 = pnand %p539_p8, %p536_p7 }
 0x151   :  { %544 = shalt.err (!%p541_p9)
}
 0x152   :  { %331 = dma.vmem_to_hbm [thread:$0]  %s326_s6, 2048, %s618_s2, [#allocation5], %s552_s19, %s552_s19, %s553_s20  }
 0x153   :  { %549 = dma.done.wait [#allocation5], 2048  }
 0x154   :  { %550 = vsyncadd [#allocation5], 4294965248 }
 0x155   :  { %335 = vsyncpa [#allocation4], 1 }
 0x156   :  { %336 = vsyncpa [#allocation7], 1 }
 0x157   :  { %337 = vsyncpa [#allocation5], 1 }

</bundles_post_ra>
